<compile_context>
chip_gen: v5e
topology: v5e:2x2
jax: 0.10.0
libtpu: 0.0.40
codegen_flags: <defaults>
</compile_context>

<pallas_src>
import jax
import jax.numpy as jnp
from jax import lax
from jax.experimental import pallas as pl
from jax.experimental.pallas import tpu as pltpu


def _make_kernel(k, s, bt, L, C, W, L_out, W_out, pad_front, pad_end):
    inv = 1.0 / float(k * k)

    def slice_w(a, start):
        # a: [bt, L, C, W + k - 1] -> window starting at `start` along W.
        stop = start + (W_out - 1) * s + 1
        if s == 1:
            return a[:, :, :, start:stop]
        # TODO(synk): stride > 1 relies on a lane-strided slice; only s == 1 is
        # exercised by the self-test (series-decomposition blocks use stride=1).
        return lax.slice(a, (0, 0, 0, start), (bt, L, C, stop), (1, 1, 1, s))

    def slice_l(a, start):
        # a: [bt, L + k - 1, C, W_out] -> window starting at `start` along L.
        stop = start + (L_out - 1) * s + 1
        if s == 1:
            return a[:, start:stop]
        return lax.slice(a, (0, start, 0, 0), (bt, stop, C, W_out), (1, s, 1, 1))

    def kernel(x_ref, o_ref):
        x = x_ref[...].astype(jnp.float32)                        # [bt, L, C, W]

        # --- replicate-pad along W (last / lane dim), in VMEM ---
        parts = []
        if pad_front:
            parts.append(jnp.broadcast_to(x[:, :, :, 0:1], (bt, L, C, pad_front)))
        parts.append(x)
        if pad_end:
            parts.append(jnp.broadcast_to(x[:, :, :, W - 1:W], (bt, L, C, pad_end)))
        xw = jnp.concatenate(parts, axis=3) if len(parts) > 1 else parts[0]

        # --- 1-D window sum over W ---
        col = slice_w(xw, 0)
        for dj in range(1, k):
            col = col + slice_w(xw, dj)                           # [bt, L, C, W_out]

        # --- replicate-pad along L (untiled leading dim) ---
        parts = []
        if pad_front:
            parts.append(jnp.broadcast_to(col[:, 0:1], (bt, pad_front, C, W_out)))
        parts.append(col)
        if pad_end:
            parts.append(jnp.broadcast_to(col[:, L - 1:L], (bt, pad_end, C, W_out)))
        xl = jnp.concatenate(parts, axis=1) if len(parts) > 1 else parts[0]

        # --- 1-D window sum over L, then a single scale ---
        acc = slice_l(xl, 0)
        for di in range(1, k):
            acc = acc + slice_l(xl, di)                           # [bt, L_out, C, W_out]

        o_ref[...] = (acc * inv).astype(o_ref.dtype)

    return kernel


def _pick_batch_tile(B, per_elem_f32_bytes, budget_bytes=1 << 20):
    """Largest divisor of B whose f32 slab fits the budget; keep >= 2 grid steps."""
    max_bt = B if B < 2 else B // 2
    best = 1
    for bt in range(1, max_bt + 1):
        if B % bt == 0 and bt * per_elem_f32_bytes <= budget_bytes:
            best = bt
    return best


def moving_avg2d_pallas(x, kernel_size, stride):
    """x: [B, L, C, W] -> [B, L_out, C, W_out]; same semantics as the PyTorch module."""
    B, L, C, W = x.shape
    k = int(kernel_size)
    s = int(stride)
    pad_end = (k - 1) // 2
    pad_front = (k - 1) - pad_end
    L_out = (L + (k - 1) - k) // s + 1                            # pool over padded L + k - 1
    W_out = (W + (k - 1) - k) // s + 1

    bt = _pick_batch_tile(B, L * C * W * 4)
    kernel = _make_kernel(k, s, bt, L, C, W, L_out, W_out, pad_front, pad_end)

    itemsize = x.dtype.itemsize
    adds = B * C * ((k - 1) * L * W_out + k * L_out * W_out)      # separable passes + scale
    cost = pl.CostEstimate(
        flops=adds,
        transcendentals=0,
        bytes_accessed=x.size * itemsize + B * L_out * C * W_out * itemsize)

    return pl.pallas_call(
        kernel,
        out_shape=jax.ShapeDtypeStruct((B, L_out, C, W_out), x.dtype),
        grid=(B // bt,),
        in_specs=[pl.BlockSpec((bt, L, C, W), lambda b: (b, 0, 0, 0))],
        out_specs=pl.BlockSpec((bt, L_out, C, W_out), lambda b: (b, 0, 0, 0)),
        compiler_params=pltpu.CompilerParams(
            dimension_semantics=("parallel",),
            vmem_limit_bytes=32 << 20),
        cost_estimate=cost,
    )(x)


def moving_avg2d_ref(x, kernel_size, stride):
    """Pure-JAX reference mirroring the PyTorch forward exactly."""
    k, s = int(kernel_size), int(stride)
    pe = (k - 1) // 2
    pf = k - 1 - pe
    B, L, C, W = x.shape
    front = jnp.repeat(x[:, 0:1], pf, axis=1)
    end = jnp.repeat(x[:, L - 1:L], pe, axis=1)
    xp = jnp.concatenate([front, x, end], axis=1)
    front = jnp.repeat(xp[:, :, :, 0:1], pf, axis=3)
    end = jnp.repeat(xp[:, :, :, -1:], pe, axis=3)
    xp = jnp.concatenate([front, xp, end], axis=3)
    xp = jnp.transpose(xp, (0, 2, 1, 3))                          # [B, C, L+k-1, W+k-1]
    pooled = lax.reduce_window(
        xp, jnp.array(0.0, xp.dtype), lax.add,
        window_dimensions=(1, 1, k, k),
        window_strides=(1, 1, s, s),
        padding="VALID") / float(k * k)
    return jnp.transpose(pooled, (0, 2, 1, 3))                    # [B, L_out, C, W_out]


if __name__ == "__main__":
    key0, key1 = jax.random.split(jax.random.PRNGKey(0))

    # primary shape: batch=2, seq=16, channels=4, width=16  -> bt=1, grid=(2,)
    x2 = jax.random.normal(key0, (2, 16, 4, 16), dtype=jnp.float32)
    # larger batch to exercise the batch-tile > 1 path        -> bt=2, grid=(2,)
    x4 = jax.random.normal(key1, (4, 16, 4, 16), dtype=jnp.float32)

    cases = [(x2, 3, 1), (x2, 4, 1), (x2, 5, 1), (x4, 3, 1)]     # odd & even k (asymmetric pad)
    for xi, kernel_size, stride in cases:
        y = jax.block_until_ready(moving_avg2d_pallas(xi, kernel_size, stride))
        y_ref = moving_avg2d_ref(xi, kernel_size, stride)
        assert y.shape == y_ref.shape, f"shape mismatch {y.shape} vs {y_ref.shape}"
        assert jnp.allclose(y, y_ref, atol=1e-5, rtol=1e-5), \
            f"mismatch vs reference (k={kernel_size}, s={stride}, B={xi.shape[0]})"

    print("KERNEL_OK")
</pallas_src>

<mosaic_0001>
module attributes {stable_mosaic.version = 11 : i64} {
  func.func @kernel(%arg0: i32, %arg1: memref<1x16x4x16xf32, #tpu.memory_space<vmem>>, %arg2: memref<1x16x4x16xf32, #tpu.memory_space<vmem>>) attributes {dimension_semantics = [#tpu.dimension_semantics<parallel>], iteration_bounds = array<i64: 2>, scalar_prefetch = 0 : i64, scratch_operands = 0 : i64, tpu.core_type = #tpu.core_type<tc>, window_params = [{transform_indices = @transform_0, window_bounds = array<i64: 1, 16, 4, 16>}, {transform_indices = @transform_1, window_bounds = array<i64: 1, 16, 4, 16>}]} {
    %c0 = arith.constant 0 : index
    %c0_0 = arith.constant 0 : index
    %c0_1 = arith.constant 0 : index
    %c0_2 = arith.constant 0 : index
    %0 = vector.load %arg1[%c0, %c0_0, %c0_1, %c0_2] : memref<1x16x4x16xf32, #tpu.memory_space<vmem>>, vector<1x16x4x16xf32>
    %1 = vector.extract_strided_slice %0 {offsets = [0, 0, 0, 0], sizes = [1, 16, 4, 1], strides = [1, 1, 1, 1]} : vector<1x16x4x16xf32> to vector<1x16x4x1xf32>
    %2 = vector.extract_strided_slice %0 {offsets = [0, 0, 0, 15], sizes = [1, 16, 4, 1], strides = [1, 1, 1, 1]} : vector<1x16x4x16xf32> to vector<1x16x4x1xf32>
    %3 = tpu.concatenate %1, %0, %2 in 3 : vector<1x16x4x1xf32>, vector<1x16x4x16xf32>, vector<1x16x4x1xf32> -> vector<1x16x4x18xf32>
    %4 = vector.extract_strided_slice %3 {offsets = [0, 0, 0, 0], sizes = [1, 16, 4, 16], strides = [1, 1, 1, 1]} : vector<1x16x4x18xf32> to vector<1x16x4x16xf32>
    %5 = vector.extract_strided_slice %3 {offsets = [0, 0, 0, 1], sizes = [1, 16, 4, 16], strides = [1, 1, 1, 1]} : vector<1x16x4x18xf32> to vector<1x16x4x16xf32>
    %6 = arith.addf %4, %5 : vector<1x16x4x16xf32>
    %7 = vector.extract_strided_slice %3 {offsets = [0, 0, 0, 2], sizes = [1, 16, 4, 16], strides = [1, 1, 1, 1]} : vector<1x16x4x18xf32> to vector<1x16x4x16xf32>
    %8 = arith.addf %6, %7 : vector<1x16x4x16xf32>
    %9 = vector.extract_strided_slice %8 {offsets = [0, 0, 0, 0], sizes = [1, 1, 4, 16], strides = [1, 1, 1, 1]} : vector<1x16x4x16xf32> to vector<1x1x4x16xf32>
    %10 = vector.extract_strided_slice %8 {offsets = [0, 15, 0, 0], sizes = [1, 1, 4, 16], strides = [1, 1, 1, 1]} : vector<1x16x4x16xf32> to vector<1x1x4x16xf32>
    %11 = tpu.concatenate %9, %8, %10 in 1 : vector<1x1x4x16xf32>, vector<1x16x4x16xf32>, vector<1x1x4x16xf32> -> vector<1x18x4x16xf32>
    %12 = vector.extract_strided_slice %11 {offsets = [0, 0, 0, 0], sizes = [1, 16, 4, 16], strides = [1, 1, 1, 1]} : vector<1x18x4x16xf32> to vector<1x16x4x16xf32>
    %13 = vector.extract_strided_slice %11 {offsets = [0, 1, 0, 0], sizes = [1, 16, 4, 16], strides = [1, 1, 1, 1]} : vector<1x18x4x16xf32> to vector<1x16x4x16xf32>
    %14 = arith.addf %12, %13 : vector<1x16x4x16xf32>
    %15 = vector.extract_strided_slice %11 {offsets = [0, 2, 0, 0], sizes = [1, 16, 4, 16], strides = [1, 1, 1, 1]} : vector<1x18x4x16xf32> to vector<1x16x4x16xf32>
    %16 = arith.addf %14, %15 : vector<1x16x4x16xf32>
    %cst = arith.constant 0.111111112 : f32
    %17 = vector.broadcast %cst : f32 to vector<1x16x4x16xf32>
    %18 = arith.mulf %16, %17 : vector<1x16x4x16xf32>
    %c0_3 = arith.constant 0 : index
    %c0_4 = arith.constant 0 : index
    %c0_5 = arith.constant 0 : index
    %c0_6 = arith.constant 0 : index
    %19 = vector.load %arg2[%c0_3, %c0_4, %c0_5, %c0_6] : memref<1x16x4x16xf32, #tpu.memory_space<vmem>>, vector<1x16x4x16xf32>
    tpu.vector_store %arg2[%c0_3, %c0_4, %c0_5, %c0_6], %18 {strides = array<i32>} : memref<1x16x4x16xf32, #tpu.memory_space<vmem>>, vector<1x16x4x16xf32>,
    return
  }
  func.func @transform_0(%arg0: i32) -> (i32, i32, i32, i32) {
    %c0_i32 = arith.constant 0 : i32
    %c0_i32_0 = arith.constant 0 : i32
    %c0_i32_1 = arith.constant 0 : i32
    %c0_i32_2 = arith.constant 0 : i32
    return %arg0, %c0_i32, %c0_i32_0, %c0_i32_1 : i32, i32, i32, i32
  }
  func.func @transform_1(%arg0: i32) -> (i32, i32, i32, i32) {
    %c0_i32 = arith.constant 0 : i32
    %c0_i32_0 = arith.constant 0 : i32
    %c0_i32_1 = arith.constant 0 : i32
    %c0_i32_2 = arith.constant 0 : i32
    return %arg0, %c0_i32, %c0_i32_0, %c0_i32_1 : i32, i32, i32, i32
  }
}

</mosaic_0001>

<bundles_post_ra>
// kernel: tpu_custom_call.1
= control target key start
LH: loop header
LB: loop body
LE: loop exit
PB: predicated region body
PF: predicated region fallthrough
CT: control target
= control target key end

     0   :  { %6 = vsyncpa [#allocation3], 0  ;;  %s1225_s0 = inlined_call_operand.hbm [shape: f32[2,16,4,16], index: 0, kind: input, shape index: {}]   ;;  %s1226_s1 = inlined_call_operand.hbm [shape: f32[2,16,4,16], index: 1, kind: output, shape index: {}]  }
   0x1   :  { %8 = vsyncpa [#allocation3 + $0x1], 0 }
   0x2   :  { %9 = vsyncpa [#allocation4], 0 }
   0x3   :  { %11 = vsyncpa [#allocation4 + $0x1], 0  ;;  %s783_s6 = smov 0   ;;  %s785_s7 = smov 0  }
   0x4   :  { %s787_s8 = smov 0   ;;  %s789_s9 = smov 0  }
   0x5 LB: > { %s804_s10 = sadd.s32 4294967295, %s763_s9   ;;  %s597_s11 = sadd.s32 4294967294, %s763_s9   ;;  %s763_s9 = sphi %s789_s9, %s1236_s9   ;;  %s759_s8 = sphi %s787_s8, %s1235_s8   ;;  %s755_s7 = sphi %s785_s7, %s1234_s7   ;;  %s751_s6 = sphi %s783_s6, %s1233_s6  }
   0x6   : > { %s808_s12 = sadd.s32 1, %s763_s9   ;;  %s24_s13 = sadd.s32 1, %s759_s8 }
   0x7   : > { %s21_s14 = ssub.s32 %s763_s9, %s808_s12  ;;  %p31_p0 = scmp.ne.s32.totalorder %s759_s8, %s755_s7 }
   0x8   : > { %p22_p1 = scmp.eq.s32.totalorder %s21_s14, 0  ;;  %p32_p2 = scmp.eq.s32.totalorder %s763_s9, 0 }
   0x9   : > { %p37_p3 = scmp.ne.s32.totalorder %s755_s7, %s751_s6  ;;  %p38_p4 = scmp.eq.s32.totalorder %s804_s10, 0 }
   0xa   : > { %s820_s15 = scalar_select %p22_p1, %s759_s8, %s24_s13  }
   0xb   : > { %p822_p5 = por %p32_p2, %p31_p0  ;;  %p826_p6 = por %p38_p4, %p37_p3 }
   0xc   : > { %p61_p7 = scmp.eq.s32.totalorder %s804_s10, 1  ;;  %p67_p8 = scmp.eq.s32.totalorder %s597_s11, 1 }
   0xd   : > { %p625_p10 = scmp.lt.s32.totalorder %s763_s9, 2  ;;  %s87_s20 = sand.u32 1, %s759_s8  }
   0xe   : > { %p833_p11 = por %p61_p7, %p31_p0  ;;  %p837_p12 = por %p67_p8, %p37_p3 }
   0xf   : > { %s611_s21 = sshll.u32 %s763_s9, 6  ;;  %s600_s22 = sshll.u32 %s87_s20, 6 }
  0x10   : > { %s96_s25 = scalar_lea.hbm %s1225_s0, %s611_s21  ;;  %s91_s27 = scalar_lea.vmem [#allocation2], %s600_s22 }
  0x11   : > { %s97_s26 = sshll.u32 %s96_s25, 4  ;;  %s99_s28 = sshll.u32 %s91_s27, 4  ;;  %s98_s26 = int_to_ptr.hbm [resolvable:$true] %s97_s26  ;;  %s100_s28 = int_to_ptr.vmem [resolvable:$true] %s99_s28 }
  0x12   : > { %p848_p13 = pnand %p625_p10, %p822_p5  ;;  %p603_p0 = scmp.ge.s32.totalorder %s763_s9, 1 }
  0x13   : > { %p107_p1 = scmp.lt.s32.totalorder %s763_s9, 3  ;;  %s88_s30 = scalar_lea.sflag [#allocation3], %s87_s20 }
  0x14   : > { %s667_s2 = sshra.s32 %s98_s26, 4  ;;  %p671_p3 = pneg %p848_p13  ;;  %s668_s2 = int_to_ptr.hbm [resolvable:$true] %s667_s2 }
  0x15   : > { %s669_s3 = scalar_lea.hbm %s668_s2, 64  ;;  %s674_s11 = scalar_lea.hbm %s1225_s0, 128 }
  0x16   : > { %p670_p2 = scmp.ne.s32.totalorder %s668_s2, %s669_s3  ;;  %p675_p5 = scmp.lt.s32.totalorder %s668_s2, %s1225_s0 }
  0x17   : > { %p676_p8 = scmp.lt.s32.totalorder %s674_s11, %s669_s3 }
  0x18   : > { %p672_p4 = pnand %p671_p3, %p670_p2 }
  0x19   : > { %p677_p10 = por %p676_p8, %p675_p5 }
  0x1a   : > { %p673_p7 = pneg %p672_p4 }
  0x1c   : > { %p678_p9 = pnand %p677_p10, %p673_p7 }
  0x1e   : > { %681 = shalt.err (!%p678_p9)
}
  0x1f   : > { %s765_s16 = smov 64   ;;  %s766_s20 = smov 4  }
  0x20   : > { %620 = dma.hbm_to_vmem [thread:$0]  (!%p848_p13), %s98_s26, 1024, %s100_s28, %s88_s30, %s765_s16, %s765_s16, %s766_s20  }
  0x21   : > { %p108_p2 = pnand %p603_p0, %p107_p1 }
  0x22   : > { %s869_s21 = sand.u32 (!%p108_p2), 1, %s755_s7  }
  0x23   : > { %111 = sbr.rel (%p108_p2) target bundleno = 407 (0x197), region = 24  ;;  %s604_s22 = sshll.u32 (!%p108_p2), %s869_s21, 6 }
  0x24   : > { %s114_s23 = scalar_lea.sflag (!%p108_p2), [#allocation3], %s869_s21  ;;  %s875_s24 = scalar_lea.vmem (!%p108_p2), [#allocation2], %s604_s22 }
  0x28   : > { %742 = dma.done.wait (%p826_p6), %s114_s23, 1024  }
  0x29   : > { %744 = vsyncadd (%p826_p6), %s114_s23, 4294966272  ;;  %v882_v0 = vld [vmem:[%s875_s24 + $0x10] sm:$0xf]  ;;  %v885_v1 = vld [vmem:[%s875_s24 + $0x8] sm:$0xf]  ;;  %s767_s25 = smov 1  }
  0x2a   : > { %v888_v2 = vld [vmem:[%s875_s24] sm:$0xf]  ;;  %177 = vrot.lane.b32.xlu2 %v882_v0, %s767_s25  ;;  %173 = vrot.lane.b32.xlu1 %v885_v1, %s767_s25  ;;  %v897_v3 = vld [vmem:[%s875_s24 + $0x14] sm:$0xf]  ;;  %s768_s17 = smov 2   ;;  %vm282_vm0 = vcmask 138240  }
  0x2b   : > { %169 = vrot.lane.b32.xlu0 %v888_v2, %s767_s25  ;;  %v900_v4 = vld [vmem:[%s875_s24 + $0xc] sm:$0xf]  ;;  %v138_v5 = vld [vmem:[%s875_s24 + $0x4] sm:$0xf]  ;;  %v909_v6 = vld [vmem:[%s875_s24 + $0x20] sm:$0xf] }
  0x2c   : > { %v144_v7 = vld [vmem:[%s875_s24 + $0x1c] sm:$0xf]  ;;  %v913_v8 = vld [vmem:[%s875_s24 + $0x18] sm:$0xf]  ;;  %v921_v9 = vld [vmem:[%s875_s24 + $0x2c] sm:$0xf] }
  0x2d   : > { %v147_v10 = vld [vmem:[%s875_s24 + $0x28] sm:$0xf]  ;;  %v925_v11 = vld [vmem:[%s875_s24 + $0x24] sm:$0xf]  ;;  %v933_v12 = vld [vmem:[%s875_s24 + $0x38] sm:$0xf] }
  0x2e   : > { %v936_v13 = vld [vmem:[%s875_s24 + $0x34] sm:$0xf]  ;;  %v939_v14 = vld [vmem:[%s875_s24 + $0x30] sm:$0xf]  ;;  %v948_v15 = vld [vmem:[%s875_s24 + $0x3c] sm:$0xf] }
  0x2f   : > { %vm265_vm1 = vcmask 7168   ;;  %s769_s26 = smov 127   ;;  %s770_s27 = smov 126   ;;  %vm491_vm2 = vcmask 125952  }
  0x30   : > { %s1130_s28 = scalar_lea.vmem [#allocation5], %s604_s22  ;;  %s612_s29 = sshll.u32 %s804_s10, 6 }
  0x31   : > { %s520_s3 = scalar_lea.hbm %s1226_s1, %s612_s29  ;;  %s521_s10 = sshll.u32 %s1130_s28, 4  ;;  %s522_s10 = int_to_ptr.vmem [resolvable:$true] %s521_s10 }
  0x32   : > { %179 = vrot.lane.b32.xlu2 %v897_v3, %s767_s25  ;;  %175 = vrot.lane.b32.xlu1 %v900_v4, %s767_s25  ;;  %s523_s4 = sshll.u32 %s520_s3, 4  ;;  %s509_s5 = scalar_lea.sflag [#allocation4], %s869_s21  ;;  %s524_s4 = int_to_ptr.hbm [resolvable:$true] %s523_s4 }
  0x33   : > { %171 = vrot.lane.b32.xlu0 %v138_v5, %s767_s25  ;;  %s711_s11 = sshra.s32 %s524_s4, 4  ;;  %s717_s20 = scalar_lea.hbm %s1226_s1, 128  ;;  %s712_s11 = int_to_ptr.hbm [resolvable:$true] %s711_s11 }
  0x34   : > { %s713_s13 = scalar_lea.hbm %s712_s11, 64  ;;  %p718_p0 = scmp.lt.s32.totalorder %s712_s11, %s1226_s1 }
  0x35   : > { %p714_p6 = scmp.ne.s32.totalorder %s712_s11, %s713_s13  ;;  %p719_p1 = scmp.lt.s32.totalorder %s717_s20, %s713_s13 }
  0x37   : > { %p715_p9 = pnand %p714_p6, %p833_p11  ;;  %p720_p3 = por %p719_p1, %p718_p0 }
  0x39   : > { %p716_p13 = pneg %p715_p9 }
  0x3a   : > { %185 = vrot.lane.b32.xlu2 %v909_v6, %s767_s25  ;;  %183 = vrot.lane.b32.xlu1 %v144_v7, %s767_s25 }
  0x3b   : > { %181 = vrot.lane.b32.xlu0 %v913_v8, %s767_s25  ;;  %p721_p4 = pnand %p720_p3, %p716_p13 }
  0x42   : > { %191 = vrot.lane.b32.xlu2 %v921_v9, %s767_s25  ;;  %189 = vrot.lane.b32.xlu1 %v147_v10, %s767_s25 }
  0x43   : > { %187 = vrot.lane.b32.xlu0 %v925_v11, %s767_s25 }
  0x4a   : > { %197 = vrot.lane.b32.xlu2 %v933_v12, %s767_s25  ;;  %195 = vrot.lane.b32.xlu1 %v936_v13, %s767_s25 }
  0x4b   : > { %193 = vrot.lane.b32.xlu0 %v939_v14, %s767_s25 }
  0x52   : > { %219 = vrot.lane.b32.xlu2 %v138_v5, %s768_s17  ;;  %217 = vrot.lane.b32.xlu1 %v888_v2, %s768_s17 }
  0x53   : > { %199 = vrot.lane.b32.xlu0 %v948_v15, %s767_s25 }
  0x5a   : > { %225 = vrot.lane.b32.xlu2 %v882_v0, %s768_s17  ;;  %223 = vrot.lane.b32.xlu1 %v900_v4, %s768_s17 }
  0x5b   : > { %221 = vrot.lane.b32.xlu0 %v885_v1, %s768_s17 }
  0x62   : > { %231 = vrot.lane.b32.xlu2 %v144_v7, %s768_s17  ;;  %229 = vrot.lane.b32.xlu1 %v913_v8, %s768_s17 }
  0x63   : > { %227 = vrot.lane.b32.xlu0 %v897_v3, %s768_s17 }
  0x6a   : > { %237 = vrot.lane.b32.xlu2 %v147_v10, %s768_s17  ;;  %235 = vrot.lane.b32.xlu1 %v925_v11, %s768_s17 }
  0x6b   : > { %233 = vrot.lane.b32.xlu0 %v909_v6, %s768_s17 }
  0x72   : > { %243 = vrot.lane.b32.xlu2 %v936_v13, %s768_s17  ;;  %241 = vrot.lane.b32.xlu1 %v939_v14, %s768_s17 }
  0x73   : > { %239 = vrot.lane.b32.xlu0 %v921_v9, %s768_s17 }
  0x7a   : > { %247 = vrot.lane.b32.xlu1 %v948_v15, %s768_s17 }
  0x7b   : > { %245 = vrot.lane.b32.xlu0 %v933_v12, %s768_s17 }
  0x84   : > { %v178_v16 = vpop.permute.xlu2 %177 }
  0x85   : > { %v270_v30 = vsel %vm265_vm1, %v882_v0, %v178_v16 }
  0x8c   : > { %v180_v17 = vpop.permute.xlu2 %179 }
  0x8d   : > { %v271_v58 = vsel %vm265_vm1, %v897_v3, %v180_v17 }
  0x94   : > { %v186_v18 = vpop.permute.xlu2 %185 }
  0x95   : > { %v274_v0 = vsel %vm265_vm1, %v909_v6, %v186_v18 }
  0x9c   : > { %v965_v19 = vpop.permute.xlu2 %191  ;;  %v174_v20 = vpop.permute.xlu1 %173 }
  0x9d   : > { %v170_v21 = vpop.permute.xlu0 %169  ;;  %v268_v51 = vsel %vm265_vm1, %v885_v1, %v174_v20  ;;  %v277_v6 = vsel %vm265_vm1, %v921_v9, %v965_v19 }
  0x9e   : > { %v266_v41 = vsel %vm265_vm1, %v888_v2, %v170_v21 }
  0xa4   : > { %v967_v22 = vpop.permute.xlu2 %197  ;;  %v176_v23 = vpop.permute.xlu1 %175 }
  0xa5   : > { %v172_v24 = vpop.permute.xlu0 %171  ;;  %v269_v48 = vsel %vm265_vm1, %v900_v4, %v176_v23 }
  0xa6   : > { %v267_v25 = vsel %vm265_vm1, %v138_v5, %v172_v24 }
  0xac   : > { %v184_v26 = vpop.permute.xlu1 %183  ;;  %v220_v27 = vpop.permute.xlu2 %219 }
  0xad   : > { %v182_v28 = vpop.permute.xlu0 %181  ;;  %v971_v29 = vsel %vm282_vm0, %v267_v25, %v220_v27  ;;  %v273_v35 = vsel %vm265_vm1, %v144_v7, %v184_v26 }
  0xae   : > { %317 = vrot.lane.b32.xlu0 %v971_v29, %s769_s26  ;;  %v272_v56 = vsel %vm265_vm1, %v913_v8, %v182_v28 }
  0xb4   : > { %v190_v31 = vpop.permute.xlu1 %189  ;;  %v226_v32 = vpop.permute.xlu2 %225 }
  0xb5   : > { %v188_v33 = vpop.permute.xlu0 %187  ;;  %v978_v34 = vsel %vm282_vm0, %v270_v30, %v226_v32  ;;  %v276_v40 = vsel %vm265_vm1, %v147_v10, %v190_v31 }
  0xb6   : > { %323 = vrot.lane.b32.xlu0 %v978_v34, %s769_s26  ;;  %v275_v62 = vsel %vm265_vm1, %v925_v11, %v188_v33 }
  0xbc   : > { %v196_v36 = vpop.permute.xlu1 %195  ;;  %v232_v37 = vpop.permute.xlu2 %231 }
  0xbd   : > { %v194_v38 = vpop.permute.xlu0 %193  ;;  %v984_v39 = vsel %vm282_vm0, %v273_v35, %v232_v37  ;;  %v279_v47 = vsel %vm265_vm1, %v936_v13, %v196_v36  ;;  %v280_v13 = vsel %vm265_vm1, %v933_v12, %v967_v22 }
  0xbe   : > { %329 = vrot.lane.b32.xlu0 %v984_v39, %s769_s26  ;;  %v278_v4 = vsel %vm265_vm1, %v939_v14, %v194_v38 }
  0xc4   : > { %v238_v42 = vpop.permute.xlu2 %237  ;;  %v218_v43 = vpop.permute.xlu1 %217 }
  0xc5   : > { %v200_v44 = vpop.permute.xlu0 %199  ;;  %v992_v45 = vsel %vm282_vm0, %v266_v41, %v218_v43  ;;  %v995_v46 = vsel %vm282_vm0, %v276_v40, %v238_v42 }
  0xc6   : > { %315 = vrot.lane.b32.xlu2 %v992_v45, %s769_s26  ;;  %335 = vrot.lane.b32.xlu0 %v995_v46, %s769_s26  ;;  %v281_v11 = vsel %vm265_vm1, %v948_v15, %v200_v44 }
  0xcc   : > { %v244_v49 = vpop.permute.xlu2 %243  ;;  %v224_v50 = vpop.permute.xlu1 %223 }
  0xcd   : > { %v222_v52 = vpop.permute.xlu0 %221  ;;  %v1008_v53 = vsel %vm282_vm0, %v269_v48, %v224_v50  ;;  %v1011_v54 = vsel %vm282_vm0, %v279_v47, %v244_v49 }
  0xce   : > { %321 = vrot.lane.b32.xlu2 %v1008_v53, %s769_s26  ;;  %341 = vrot.lane.b32.xlu0 %v1011_v54, %s769_s26  ;;  %v1018_v55 = vsel %vm282_vm0, %v268_v51, %v222_v52 }
  0xcf   : > { %319 = vrot.lane.b32.xlu1 %v1018_v55, %s769_s26 }
  0xd4   : > { %v230_v57 = vpop.permute.xlu1 %229 }
  0xd5   : > { %v228_v59 = vpop.permute.xlu0 %227  ;;  %v1027_v60 = vsel %vm282_vm0, %v272_v56, %v230_v57 }
  0xd6   : > { %379 = vrot.lane.b32.xlu0 %v992_v45, %s770_s27  ;;  %327 = vrot.lane.b32.xlu2 %v1027_v60, %s769_s26  ;;  %v1034_v61 = vsel %vm282_vm0, %v271_v58, %v228_v59 }
  0xd7   : > { %325 = vrot.lane.b32.xlu1 %v1034_v61, %s769_s26 }
  0xdc   : > { %v236_v63 = vpop.permute.xlu1 %235 }
  0xdd   : > { %v234_v1 = vpop.permute.xlu0 %233  ;;  %v1043_v2 = vsel %vm282_vm0, %v275_v62, %v236_v63 }
  0xde   : > { %385 = vrot.lane.b32.xlu0 %v1008_v53, %s770_s27  ;;  %333 = vrot.lane.b32.xlu2 %v1043_v2, %s769_s26  ;;  %v1050_v3 = vsel %vm282_vm0, %v274_v0, %v234_v1 }
  0xdf   : > { %331 = vrot.lane.b32.xlu1 %v1050_v3, %s769_s26 }
  0xe4   : > { %v242_v5 = vpop.permute.xlu1 %241 }
  0xe5   : > { %v240_v7 = vpop.permute.xlu0 %239  ;;  %v1060_v8 = vsel %vm282_vm0, %v278_v4, %v242_v5 }
  0xe6   : > { %391 = vrot.lane.b32.xlu0 %v1027_v60, %s770_s27  ;;  %339 = vrot.lane.b32.xlu2 %v1060_v8, %s769_s26  ;;  %v1067_v10 = vsel %vm282_vm0, %v277_v6, %v240_v7 }
  0xe7   : > { %337 = vrot.lane.b32.xlu1 %v1067_v10, %s769_s26 }
  0xec   : > { %v248_v9 = vpop.permute.xlu1 %247 }
  0xed   : > { %v246_v14 = vpop.permute.xlu0 %245  ;;  %v298_v16 = vsel %vm282_vm0, %v281_v11, %v248_v9 }
  0xee   : > { %397 = vrot.lane.b32.xlu0 %v1043_v2, %s770_s27  ;;  %345 = vrot.lane.b32.xlu2 %v298_v16, %s769_s26  ;;  %v297_v17 = vsel %vm282_vm0, %v280_v13, %v246_v14 }
  0xef   : > { %343 = vrot.lane.b32.xlu1 %v297_v17, %s769_s26 }
  0xf6   : > { %403 = vrot.lane.b32.xlu0 %v1060_v8, %s770_s27  ;;  %383 = vrot.lane.b32.xlu2 %v1018_v55, %s770_s27 }
  0xf7   : > { %381 = vrot.lane.b32.xlu1 %v971_v29, %s770_s27 }
  0xfe   : > { %409 = vrot.lane.b32.xlu0 %v298_v16, %s770_s27  ;;  %389 = vrot.lane.b32.xlu2 %v1034_v61, %s770_s27 }
  0xff   : > { %387 = vrot.lane.b32.xlu1 %v978_v34, %s770_s27 }
 0x106   : > { %395 = vrot.lane.b32.xlu2 %v1050_v3, %s770_s27 }
 0x107   : > { %393 = vrot.lane.b32.xlu1 %v984_v39, %s770_s27 }
 0x10e   : > { %401 = vrot.lane.b32.xlu2 %v1067_v10, %s770_s27 }
 0x10f   : > { %399 = vrot.lane.b32.xlu1 %v995_v46, %s770_s27 }
 0x116   : > { %407 = vrot.lane.b32.xlu2 %v297_v17, %s770_s27 }
 0x117   : > { %405 = vrot.lane.b32.xlu1 %v1011_v54, %s770_s27 }
 0x120   : > { %v316_v12 = vpop.permute.xlu2 %315  ;;  %v318_v15 = vpop.permute.xlu0 %317 }
 0x121   : > { %v363_v42 = vadd.f32 %v316_v12, %v992_v45  ;;  %v364_v44 = vadd.f32 %v318_v15, %v971_v29 }
 0x128   : > { %v322_v18 = vpop.permute.xlu2 %321  ;;  %v324_v19 = vpop.permute.xlu0 %323 }
 0x129   : > { %v366_v51 = vadd.f32 %v322_v18, %v1008_v53  ;;  %v367_v4 = vadd.f32 %v324_v19, %v978_v34 }
 0x130   : > { %v328_v20 = vpop.permute.xlu2 %327  ;;  %v1104_v21 = vpop.permute.xlu0 %329 }
 0x131   : > { %v369_v34 = vadd.f32 %v328_v20, %v1027_v60 }
 0x138   : > { %v1106_v22 = vpop.permute.xlu2 %333  ;;  %v1108_v23 = vpop.permute.xlu0 %335 }
 0x140   : > { %v1110_v24 = vpop.permute.xlu2 %339  ;;  %v1112_v25 = vpop.permute.xlu0 %341 }
 0x141   : > { %v320_v26 = vpop.permute.xlu1 %319 }
 0x142   : > { %v365_v47 = vadd.f32 %v320_v26, %v1018_v55 }
 0x148   : > { %v346_v27 = vpop.permute.xlu2 %345  ;;  %v380_v28 = vpop.permute.xlu0 %379 }
 0x149   : > { %v326_v30 = vpop.permute.xlu1 %325  ;;  %v427_v43 = vadd.f32 %v380_v28, %v363_v42  ;;  %v378_v55 = vadd.f32 %v346_v27, %v298_v16  ;;  %v372_v42 = vadd.f32 %v1106_v22, %v1043_v2  ;;  %v373_v2 = vadd.f32 %v1108_v23, %v995_v46 }
 0x14a   : > { %v368_v5 = vadd.f32 %v326_v30, %v1034_v61 }
 0x14b   : > { %v443_v52 = vadd.f32 %v427_v43, %v427_v43 }
 0x150   : > { %v384_v31 = vpop.permute.xlu2 %383  ;;  %v386_v32 = vpop.permute.xlu0 %385 }
 0x151   : > { %v332_v33 = vpop.permute.xlu1 %331  ;;  %v429_v56 = vadd.f32 %v384_v31, %v365_v47  ;;  %v430_v58 = vadd.f32 %v386_v32, %v366_v51  ;;  %v370_v31 = vadd.f32 %v1104_v21, %v984_v39 }
 0x152   : > { %v371_v32 = vadd.f32 %v332_v33, %v1050_v3 }
 0x153   : > { %v446_v61 = vadd.f32 %v430_v58, %v429_v56 }
 0x158   : > { %v390_v35 = vpop.permute.xlu2 %389  ;;  %v392_v36 = vpop.permute.xlu0 %391 }
 0x159   : > { %v1114_v37 = vpop.permute.xlu1 %337  ;;  %v432_v16 = vadd.f32 %v390_v35, %v368_v5  ;;  %v433_v15 = vadd.f32 %v392_v36, %v369_v34 }
 0x15a   : > { %v374_v22 = vadd.f32 %v1114_v37, %v1067_v10 }
 0x160   : > { %v396_v38 = vpop.permute.xlu2 %395  ;;  %v1116_v40 = vpop.permute.xlu0 %397 }
 0x161   : > { %v344_v41 = vpop.permute.xlu1 %343  ;;  %v436_v39 = vadd.f32 %v1116_v40, %v372_v42 }
 0x162   : > { %v377_v1 = vadd.f32 %v344_v41, %v297_v17 }
 0x168   : > { %v1121_v48 = vpop.permute.xlu2 %401  ;;  %v1123_v49 = vpop.permute.xlu0 %403 }
 0x169   : > { %v382_v50 = vpop.permute.xlu1 %381 }
 0x16a   : > { %v428_v57 = vadd.f32 %v382_v50, %v364_v44  ;;  %v435_v44 = vadd.f32 %v396_v38, %v371_v32 }
 0x16c   : > { %v444_v59 = vadd.f32 %v428_v57, %v427_v43  ;;  %v445_v62 = vadd.f32 %v429_v56, %v428_v57  ;;  %v459_v45 = vadd.f32 %v443_v52, %v428_v57  ;;  %v449_v43 = vadd.f32 %v433_v15, %v432_v16 }
 0x16d   : > { %v375_v57 = vadd.f32 %v1110_v24, %v1060_v8  ;;  %v376_v24 = vadd.f32 %v1112_v25, %v1011_v54 }
 0x16e   : > { %v460_v63 = vadd.f32 %v444_v59, %v429_v56  ;;  %v461_v29 = vadd.f32 %v445_v62, %v430_v58  ;;  %v475_v0 = vmul.f32 0.11111111, %v459_v45  ;;  %v438_v59 = vadd.f32 %v1121_v48, %v374_v22 }
 0x16f   : > { %v439_v46 = vadd.f32 %v1123_v49, %v375_v57 }
 0x170   : > { %v476_v6 = vmul.f32 0.11111111, %v460_v63  ;;  %v477_v53 = vmul.f32 0.11111111, %v461_v29  ;;  %492 = vst.msk [vmem:[%s1130_s28] sm:$0xf] %vm491_vm2, %v475_v0  ;;  %v408_v7 = vpop.permute.xlu2 %407  ;;  %v410_v11 = vpop.permute.xlu0 %409 }
 0x171   : > { %v1134_v9 = vadd.f32 %v408_v7, %v377_v1  ;;  %v388_v13 = vpop.permute.xlu1 %387  ;;  %v1136_v14 = vadd.f32 %v410_v11, %v378_v55  ;;  %v455_v55 = vadd.f32 %v439_v46, %v438_v59 }
 0x172   : > { %493 = vst.msk [vmem:[%s1130_s28 + $0x4] sm:$0xf] %vm491_vm2, %v476_v6  ;;  %v431_v17 = vadd.f32 %v388_v13, %v367_v4 }
 0x173   : > { %494 = vst.msk [vmem:[%s1130_s28 + $0x8] sm:$0xf] %vm491_vm2, %v477_v53  ;;  %v458_v12 = vadd.f32 %v1136_v14, %v1134_v9 }
 0x174   : > { %v447_v18 = vadd.f32 %v431_v17, %v430_v58  ;;  %v448_v19 = vadd.f32 %v432_v16, %v431_v17  ;;  %v462_v26 = vadd.f32 %v446_v61, %v431_v17  ;;  %v452_v58 = vadd.f32 %v436_v39, %v435_v44 }
 0x175   : > { %v474_v27 = vadd.f32 %v458_v12, %v1136_v14 }
 0x176   : > { %v463_v60 = vadd.f32 %v447_v18, %v432_v16  ;;  %v464_v20 = vadd.f32 %v448_v19, %v433_v15  ;;  %v478_v28 = vmul.f32 0.11111111, %v462_v26 }
 0x177   : > { %v490_v30 = vmul.f32 0.11111111, %v474_v27 }
 0x178   : > { %v479_v35 = vmul.f32 0.11111111, %v463_v60  ;;  %v480_v41 = vmul.f32 0.11111111, %v464_v20  ;;  %495 = vst.msk [vmem:[%s1130_s28 + $0xc] sm:$0xf] %vm491_vm2, %v478_v28 }
 0x179   : > { %507 = vst.msk [vmem:[%s1130_s28 + $0x3c] sm:$0xf] %vm491_vm2, %v490_v30  ;;  %v394_v36 = vpop.permute.xlu1 %393 }
 0x17a   : > { %496 = vst.msk [vmem:[%s1130_s28 + $0x10] sm:$0xf] %vm491_vm2, %v479_v35  ;;  %v434_v47 = vadd.f32 %v394_v36, %v370_v31 }
 0x17b   : > { %497 = vst.msk [vmem:[%s1130_s28 + $0x14] sm:$0xf] %vm491_vm2, %v480_v41 }
 0x17c   : > { %v450_v3 = vadd.f32 %v434_v47, %v433_v15  ;;  %v451_v21 = vadd.f32 %v435_v44, %v434_v47  ;;  %v465_v33 = vadd.f32 %v449_v43, %v434_v47 }
 0x17e   : > { %v466_v50 = vadd.f32 %v450_v3, %v435_v44  ;;  %v467_v51 = vadd.f32 %v451_v21, %v436_v39  ;;  %v481_v52 = vmul.f32 0.11111111, %v465_v33 }
 0x180   : > { %v482_v38 = vmul.f32 0.11111111, %v466_v50  ;;  %v483_v56 = vmul.f32 0.11111111, %v467_v51  ;;  %498 = vst.msk [vmem:[%s1130_s28 + $0x18] sm:$0xf] %vm491_vm2, %v481_v52 }
 0x181   : > { %v400_v40 = vpop.permute.xlu1 %399 }
 0x182   : > { %499 = vst.msk [vmem:[%s1130_s28 + $0x1c] sm:$0xf] %vm491_vm2, %v482_v38  ;;  %v437_v62 = vadd.f32 %v400_v40, %v373_v2 }
 0x183   : > { %500 = vst.msk [vmem:[%s1130_s28 + $0x20] sm:$0xf] %vm491_vm2, %v483_v56 }
 0x184   : > { %v453_v10 = vadd.f32 %v437_v62, %v436_v39  ;;  %v454_v23 = vadd.f32 %v438_v59, %v437_v62  ;;  %v468_v37 = vadd.f32 %v452_v58, %v437_v62 }
 0x186   : > { %v469_v45 = vadd.f32 %v453_v10, %v438_v59  ;;  %v470_v63 = vadd.f32 %v454_v23, %v439_v46  ;;  %v484_v8 = vmul.f32 0.11111111, %v468_v37 }
 0x188   : > { %v485_v48 = vmul.f32 0.11111111, %v469_v45  ;;  %v486_v29 = vmul.f32 0.11111111, %v470_v63  ;;  %501 = vst.msk [vmem:[%s1130_s28 + $0x24] sm:$0xf] %vm491_vm2, %v484_v8 }
 0x189   : > { %v406_v0 = vpop.permute.xlu1 %405 }
 0x18a   : > { %502 = vst.msk [vmem:[%s1130_s28 + $0x28] sm:$0xf] %vm491_vm2, %v485_v48  ;;  %v440_v49 = vadd.f32 %v406_v0, %v376_v24 }
 0x18b   : > { %503 = vst.msk [vmem:[%s1130_s28 + $0x2c] sm:$0xf] %vm491_vm2, %v486_v29 }
 0x18c   : > { %v456_v54 = vadd.f32 %v440_v49, %v439_v46  ;;  %v457_v25 = vadd.f32 %v1134_v9, %v440_v49  ;;  %v471_v1 = vadd.f32 %v455_v55, %v440_v49 }
 0x18e   : > { %v472_v4 = vadd.f32 %v456_v54, %v1134_v9  ;;  %v473_v5 = vadd.f32 %v457_v25, %v1136_v14  ;;  %v487_v6 = vmul.f32 0.11111111, %v471_v1 }
 0x190   : > { %v488_v53 = vmul.f32 0.11111111, %v472_v4  ;;  %v489_v7 = vmul.f32 0.11111111, %v473_v5  ;;  %504 = vst.msk [vmem:[%s1130_s28 + $0x30] sm:$0xf] %vm491_vm2, %v487_v6 }
 0x192   : > { %505 = vst.msk [vmem:[%s1130_s28 + $0x34] sm:$0xf] %vm491_vm2, %v488_v53 }
 0x193   : > { %506 = vst.msk [vmem:[%s1130_s28 + $0x38] sm:$0xf] %vm491_vm2, %v489_v7 }
 0x194   : > { %724 = shalt.err (!%p721_p4)
}
 0x195   : > { %s771_s21 = smov 64   ;;  %s772_s24 = smov 4  }
 0x196   : > { %615 = dma.vmem_to_hbm [thread:$0]  (%p833_p11), %s522_s10, 1024, %s524_s4, %s509_s5, %s771_s21, %s771_s21, %s772_s24  }
 0x197 PF: > { %s538_s25 = sand.u32 1, %s751_s6   ;;  %p1232_p7 = scmp.ge.s32.totalorder %s763_s9, 2 }
 0x198   : > { %s539_s17 = scalar_lea.sflag [#allocation4], %s538_s25 }
 0x199   : > { %p622_p5 = pnand %p1232_p7, %p837_p12 }
 0x19b   : > { %p623_p8 = pneg %p622_p5 }
 0x19d   : > { %746 = dma.done.wait (%p623_p8), %s539_s17, 1024  }
 0x19e   : > { %748 = vsyncadd (%p623_p8), %s539_s17, 4294966272  ;;  %p14_p10 = scmp.ge.s32.totalorder %s808_s12, 4   ;;  %s1233_s6 = smov %s755_s7 }
 0x19f   : > { %s1234_s7 = smov %s759_s8  ;;  %s1235_s8 = smov %s820_s15 }
 0x1a0   : > { %s1236_s9 = smov %s808_s12  ;;  %16 = sbr.rel (!%p14_p10) target bundleno = 5 (0x5), region = 69 }
 0x1a5   :  { %545 = vsyncpa [#allocation3], 1 }
 0x1a6   :  { %547 = vsyncpa [#allocation3 + $0x1], 1 }
 0x1a7   :  { %548 = vsyncpa [#allocation4], 1 }
 0x1a8   :  { %550 = vsyncpa [#allocation4 + $0x1], 1 }

</bundles_post_ra>
